<compile_context>
chip_gen: v7x
topology: tpu7x:2x2x1
jax: 0.10.0
libtpu: 0.0.40
codegen_flags: <defaults>
</compile_context>

<pallas_src>
import math

import jax
import jax.numpy as jnp
from jax import lax
from jax.experimental import pallas as pl
from jax.experimental.pallas import tpu as pltpu

_EPS = 1e-12           # F.normalize default eps
_EPS_SQ = _EPS * _EPS  # rsqrt(max(ss, eps^2)) == 1 / max(||v||, eps)


def _round_up(v, m):
    return ((v + m - 1) // m) * m


def _min_sublane(dtype):
    """Minimum sublane tile for a dtype: f32 -> 8, bf16 -> 16, int8/fp8 -> 32."""
    return max(8, 32 // jnp.dtype(dtype).itemsize)


def _normed_matmul_kernel(x_ref, w_ref, xs_ref, ws_ref, o_ref, acc_ref):
    """One (i, j, k) grid step of  out = (x @ W.T) * xs * ws.

    x_ref   : VMEM (tm, tk)     raw input tile (native dtype)
    w_ref   : VMEM (tn, tk)     raw fused-weight tile (PyTorch (O, D) layout)
    xs_ref  : VMEM (tm, 1) f32  eta / max(||x_row||, eps)   (precomputed)
    ws_ref  : VMEM (1, tn) f32  1 / max(||w_row||, eps)     (precomputed)
    o_ref   : VMEM (tm, tn)     output tile
    acc_ref : VMEM (tm, tn) f32 matmul accumulator, resident across k
    """
    k = pl.program_id(2)

    @pl.when(k == 0)
    def _init():
        acc_ref[...] = jnp.zeros_like(acc_ref)

    x = x_ref[...]
    w = w_ref[...]
    if x.dtype != w.dtype:
        # Opt-in bf16 weights (v6e): cast the x tile to match so the MXU runs
        # at native rate; accumulation stays f32 below.
        x = x.astype(w.dtype)

    # Un-normalized partial matmul, contracting the last dim of BOTH operands
    # (no explicit W.T -> no XLU transpose of the weight tile).
    acc_ref[...] += lax.dot_general(
        x, w, dimension_numbers=(((1,), (1,)), ((), ())),
        preferred_element_type=jnp.float32)

    # Finalize: both normalizations and eta are folded into one rescale of the
    # resident output tile (precomputed scales, f32-exact F.normalize eps).
    @pl.when(k == pl.num_programs(2) - 1)
    def _finalize():
        o_ref[...] = (acc_ref[...] * xs_ref[...] * ws_ref[...]).astype(o_ref.dtype)


def prepare_split_weights(w1, w2, *, tn=512, tk=512, weight_dtype=None):
    """One-time (parameter-setup) preparation of the SplitNormedLinear weights.

    * Fuses W1/W2 into one (O1+O2, D) matrix so the forward is a single kernel
      call with no output concat.
    * Pads to tile alignment once (off the hot path).
    * Precomputes the per-row inverse L2 norms directly in (1, Op) lane layout,
      so the kernel does zero norm work for the (static) weights.
    * Optionally stores the weights in a narrower dtype (e.g. jnp.bfloat16).
    """
    w = jnp.concatenate([jnp.asarray(w1), jnp.asarray(w2)], axis=0)
    O, D = w.shape
    tn = min(tn, _round_up(O, 128))
    tk = min(tk, _round_up(D, 128))
    Op, Dp = _round_up(O, tn), _round_up(D, tk)

    wf = w.astype(jnp.float32)
    ssw = jnp.sum(wf * wf, axis=1, keepdims=True)                   # (O, 1)
    w_inv = lax.rsqrt(jnp.maximum(ssw, _EPS_SQ))                    # 1/max(||w||,eps)
    w_inv = jnp.pad(w_inv, ((0, Op - O), (0, 0))).T                 # (1, Op) f32

    if weight_dtype is not None:
        w = w.astype(weight_dtype)
    if (Op, Dp) != (O, D):
        w = jnp.pad(w, ((0, Op - O), (0, Dp - D)))                  # zeros: neutral

    return {
        "w": w,                  # (Op, Dp) tile-aligned, PyTorch (O, D) layout
        "w_inv": w_inv,          # (1, Op) f32 inverse row norms
        "out_features": O,
        "in_features": D,
        "tn": tn,
        "tk": tk,
    }


def split_normed_linear(x, params, eta, *, tm=512, pipeline_buffers=None):
    """eta * concat([n(x) @ n(W1).T, n(x) @ n(W2).T], 1) in ONE pallas_call.

    `params` comes from prepare_split_weights (weights already fused, padded,
    norm-precomputed).  Per forward, only the x row norms are computed (one
    streaming pass over x, vs. the Op/tn passes the matmul does anyway).
    """
    w, w_inv = params["w"], params["w_inv"]
    O, D = params["out_features"], params["in_features"]
    tn, tk = params["tn"], params["tk"]
    Op, Dp = w.shape

    B, Dx = x.shape
    assert Dx == D, (Dx, D)

    # tm: dtype-aware sublane rounding (8 f32 / 16 bf16 / 32 int8-fp8).
    sub = _min_sublane(x.dtype)
    tm = max(sub, min(tm, _round_up(B, sub)))
    tm = _round_up(tm, sub)
    Bp = _round_up(B, tm)

    # Per-row inverse norm of x with eta folded in (f32, F.normalize-exact).
    xf = x.astype(jnp.float32)
    ssx = jnp.sum(xf * xf, axis=1, keepdims=True)                   # (B, 1)
    x_scale = jnp.asarray(eta, jnp.float32) * lax.rsqrt(jnp.maximum(ssx, _EPS_SQ))

    # Zero-pad x only when not already tile-aligned (zeros are neutral; padded
    # rows/cols are sliced off below).
    if (Bp, Dp) != (B, D):
        x = jnp.pad(x, ((0, Bp - B), (0, Dp - D)))
    if Bp != B:
        x_scale = jnp.pad(x_scale, ((0, Bp - B), (0, 0)))

    grid = (Bp // tm, Op // tn, Dp // tk)

    # Optional deeper pipelining for the streamed x / w tiles (v7x).
    pipe = pl.Buffered(pipeline_buffers) if pipeline_buffers is not None else None

    def _stream_spec(shape, imap):
        if pipe is None:
            return pl.BlockSpec(shape, imap)
        return pl.BlockSpec(shape, imap, pipeline_mode=pipe)

    # Explicit VMEM budget from the tile footprint (+ headroom), capped at the
    # smallest physical VMEM across generations (v7x: 64 MiB / TC).
    nbuf = pipeline_buffers if pipeline_buffers is not None else 2
    in_b = jnp.dtype(x.dtype).itemsize
    w_b = jnp.dtype(w.dtype).itemsize
    out_b = jnp.dtype(x.dtype).itemsize
    vmem_bytes = (nbuf * tm * tk * in_b          # streamed x tiles
                  + nbuf * tn * tk * w_b         # streamed w tiles
                  + nbuf * (tm + tn) * 4         # scale vectors
                  + tm * tn * 4                  # f32 accumulator
                  + 2 * tm * tn * out_b)         # output tiles
    vmem_limit = int(min(max(1.25 * vmem_bytes + (2 << 20), 32 << 20), 64 << 20))

    out = pl.pallas_call(
        _normed_matmul_kernel,
        out_shape=jax.ShapeDtypeStruct((Bp, Op), x.dtype),
        grid_spec=pltpu.PrefetchScalarGridSpec(
            num_scalar_prefetch=0,
            grid=grid,
            in_specs=[
                _stream_spec((tm, tk), lambda i, j, k: (i, k)),   # x tile
                _stream_spec((tn, tk), lambda i, j, k: (j, k)),   # w tile
                pl.BlockSpec((tm, 1), lambda i, j, k: (i, 0)),    # eta / ||x_row||
                pl.BlockSpec((1, tn), lambda i, j, k: (0, j)),    # 1 / ||w_row||
            ],
            out_specs=pl.BlockSpec((tm, tn), lambda i, j, k: (i, j)),
            scratch_shapes=[pltpu.VMEM((tm, tn), jnp.float32)],
        ),
        compiler_params=pltpu.CompilerParams(
            dimension_semantics=("parallel", "parallel", "arbitrary"),
            vmem_limit_bytes=vmem_limit,
        ),
    )(x, w, x_scale, w_inv)

    if (Bp, Op) != (B, O):
        out = out[:B, :O]
    return out


def _reference(x, w1, w2, eta):
    def normalize(v):
        n = jnp.sqrt(jnp.sum(v * v, axis=1, keepdims=True))
        return v / jnp.maximum(n, _EPS)

    o1 = normalize(x) @ normalize(w1).T
    o2 = normalize(x) @ normalize(w2).T
    return eta * jnp.concatenate([o1, o2], axis=1)


if __name__ == "__main__":
    # Small shapes consistent with the module's forward: x is (batch, in_features).
    batch = 8
    in_features = 32
    out_features1 = 16
    out_features2 = 24

    key = jax.random.PRNGKey(0)
    kx, kw1, kw2, kx2, kw3, kw4 = jax.random.split(key, 6)

    # Deterministic parameter init mirroring NormedLinear.reset_parameters():
    # weight ~ U(-stdv, stdv) with stdv = 1/sqrt(in_features); eta = 1.
    stdv = 1.0 / math.sqrt(in_features)
    x = jax.random.normal(kx, (batch, in_features), dtype=jnp.float32)
    w1 = jax.random.uniform(kw1, (out_features1, in_features),
                            minval=-stdv, maxval=stdv, dtype=jnp.float32)
    w2 = jax.random.uniform(kw2, (out_features2, in_features),
                            minval=-stdv, maxval=stdv, dtype=jnp.float32)
    eta = jnp.float32(1.0)

    params = prepare_split_weights(w1, w2)        # one-time weight prep
    out = jax.block_until_ready(split_normed_linear(x, params, eta))

    ref = _reference(x, w1, w2, eta)
    assert out.shape == (batch, out_features1 + out_features2), out.shape
    err = float(jnp.max(jnp.abs(out - ref)))
    assert jnp.allclose(out, ref, atol=1e-4, rtol=1e-4), err

    # Second check: non-aligned shapes exercising a multi-block (i, j, k) grid
    # and the zero-padding paths.
    B2, D2, O1b, O2b = 40, 200, 100, 72
    stdv2 = 1.0 / math.sqrt(D2)
    x2 = jax.random.normal(kx2, (B2, D2), dtype=jnp.float32)
    w3 = jax.random.uniform(kw3, (O1b, D2), minval=-stdv2, maxval=stdv2,
                            dtype=jnp.float32)
    w4 = jax.random.uniform(kw4, (O2b, D2), minval=-stdv2, maxval=stdv2,
                            dtype=jnp.float32)
    eta2 = jnp.float32(0.7)

    params2 = prepare_split_weights(w3, w4, tn=128, tk=128)
    out2 = jax.block_until_ready(split_normed_linear(x2, params2, eta2, tm=16))
    ref2 = _reference(x2, w3, w4, eta2)
    assert out2.shape == (B2, O1b + O2b), out2.shape
    err2 = float(jnp.max(jnp.abs(out2 - ref2)))
    assert jnp.allclose(out2, ref2, atol=1e-4, rtol=1e-4), err2

    print("KERNEL_OK")
</pallas_src>

<mosaic_0001>
module attributes {stable_mosaic.version = 11 : i64} {
  func.func @_normed_matmul_kernel(%arg0: i32, %arg1: i32, %arg2: i32, %arg3: memref<8x128xf32, #tpu.memory_space<vmem>>, %arg4: memref<128x128xf32, #tpu.memory_space<vmem>>, %arg5: memref<8x1xf32, #tpu.memory_space<vmem>>, %arg6: memref<1x128xf32, #tpu.memory_space<vmem>>, %arg7: memref<8x128xf32, #tpu.memory_space<vmem>>, %arg8: memref<8x128xf32, #tpu.memory_space<vmem>>) attributes {dimension_semantics = [#tpu.dimension_semantics<parallel>, #tpu.dimension_semantics<parallel>, #tpu.dimension_semantics<arbitrary>], iteration_bounds = array<i64: 1, 1, 1>, scalar_prefetch = 0 : i64, scratch_operands = 1 : i64, tpu.core_type = #tpu.core_type<tc>, window_params = [{transform_indices = @transform_0, window_bounds = array<i64: 8, 128>}, {transform_indices = @transform_1, window_bounds = array<i64: 128, 128>}, {transform_indices = @transform_2, window_bounds = array<i64: 8, 1>}, {transform_indices = @transform_3, window_bounds = array<i64: 1, 128>}, {transform_indices = @transform_4, window_bounds = array<i64: 8, 128>}]} {
    %c0_i32 = arith.constant 0 : i32
    %0 = arith.cmpi eq, %arg2, %c0_i32 : i32
    %1 = arith.extui %0 : i1 to i32
    %c0_i32_0 = arith.constant 0 : i32
    %2 = arith.cmpi ne, %1, %c0_i32_0 : i32
    scf.if %2 {
      %cst_10 = arith.constant 0.000000e+00 : f32
      %12 = vector.broadcast %cst_10 : f32 to vector<8x128xf32>
      %c0_11 = arith.constant 0 : index
      %c0_12 = arith.constant 0 : index
      %13 = vector.load %arg8[%c0_11, %c0_12] : memref<8x128xf32, #tpu.memory_space<vmem>>, vector<8x128xf32>
      tpu.vector_store %arg8[%c0_11, %c0_12], %12 {strides = array<i32>} : memref<8x128xf32, #tpu.memory_space<vmem>>, vector<8x128xf32>,
    } else {
    }
    %c0 = arith.constant 0 : index
    %c0_1 = arith.constant 0 : index
    %3 = vector.load %arg3[%c0, %c0_1] : memref<8x128xf32, #tpu.memory_space<vmem>>, vector<8x128xf32>
    %c0_2 = arith.constant 0 : index
    %c0_3 = arith.constant 0 : index
    %4 = vector.load %arg4[%c0_2, %c0_3] : memref<128x128xf32, #tpu.memory_space<vmem>>, vector<128x128xf32>
    %c0_4 = arith.constant 0 : index
    %c0_5 = arith.constant 0 : index
    %5 = vector.load %arg8[%c0_4, %c0_5] : memref<8x128xf32, #tpu.memory_space<vmem>>, vector<8x128xf32>
    %cst = arith.constant dense<0.000000e+00> : vector<8x128xf32>
    %6 = tpu.matmul %3, %4, %cst {dimension_numbers = #tpu.dot_dimension_numbers<[1], [1], [0], [0], [0, 0, 1, 0], [], []>} : vector<8x128xf32>, vector<128x128xf32>, vector<8x128xf32> -> vector<8x128xf32>
    %7 = arith.addf %5, %6 : vector<8x128xf32>
    %c0_6 = arith.constant 0 : index
    %c0_7 = arith.constant 0 : index
    %8 = vector.load %arg8[%c0_6, %c0_7] : memref<8x128xf32, #tpu.memory_space<vmem>>, vector<8x128xf32>
    tpu.vector_store %arg8[%c0_6, %c0_7], %7 {strides = array<i32>} : memref<8x128xf32, #tpu.memory_space<vmem>>, vector<8x128xf32>,
    %c0_i32_8 = arith.constant 0 : i32
    %9 = arith.cmpi eq, %arg2, %c0_i32_8 : i32
    %10 = arith.extui %9 : i1 to i32
    %c0_i32_9 = arith.constant 0 : i32
    %11 = arith.cmpi ne, %10, %c0_i32_9 : i32
    scf.if %11 {
      %c0_10 = arith.constant 0 : index
      %c0_11 = arith.constant 0 : index
      %12 = vector.load %arg8[%c0_10, %c0_11] : memref<8x128xf32, #tpu.memory_space<vmem>>, vector<8x128xf32>
      %c0_12 = arith.constant 0 : index
      %c0_13 = arith.constant 0 : index
      %13 = vector.load %arg5[%c0_12, %c0_13] : memref<8x1xf32, #tpu.memory_space<vmem>>, vector<8x1xf32>
      %14 = vector.broadcast %13 : vector<8x1xf32> to vector<8x128xf32>
      %15 = arith.mulf %12, %14 : vector<8x128xf32>
      %c0_14 = arith.constant 0 : index
      %c0_15 = arith.constant 0 : index
      %16 = vector.load %arg6[%c0_14, %c0_15] : memref<1x128xf32, #tpu.memory_space<vmem>>, vector<1x128xf32>
      %17 = vector.broadcast %16 : vector<1x128xf32> to vector<8x128xf32>
      %18 = arith.mulf %15, %17 : vector<8x128xf32>
      %c0_16 = arith.constant 0 : index
      %c0_17 = arith.constant 0 : index
      %19 = vector.load %arg7[%c0_16, %c0_17] : memref<8x128xf32, #tpu.memory_space<vmem>>, vector<8x128xf32>
      tpu.vector_store %arg7[%c0_16, %c0_17], %18 {strides = array<i32>} : memref<8x128xf32, #tpu.memory_space<vmem>>, vector<8x128xf32>,
    } else {
    }
    return
  }
  func.func @transform_0(%arg0: i32, %arg1: i32, %arg2: i32) -> (i32, i32) {
    %c0_i32 = arith.constant 0 : i32
    return %arg0, %arg2 : i32, i32
  }
  func.func @transform_1(%arg0: i32, %arg1: i32, %arg2: i32) -> (i32, i32) {
    %c0_i32 = arith.constant 0 : i32
    return %arg1, %arg2 : i32, i32
  }
  func.func @transform_2(%arg0: i32, %arg1: i32, %arg2: i32) -> (i32, i32) {
    %c0_i32 = arith.constant 0 : i32
    %c0_i32_0 = arith.constant 0 : i32
    return %arg0, %c0_i32 : i32, i32
  }
  func.func @transform_3(%arg0: i32, %arg1: i32, %arg2: i32) -> (i32, i32) {
    %c0_i32 = arith.constant 0 : i32
    %c0_i32_0 = arith.constant 0 : i32
    return %c0_i32, %arg1 : i32, i32
  }
  func.func @transform_4(%arg0: i32, %arg1: i32, %arg2: i32) -> (i32, i32) {
    %c0_i32 = arith.constant 0 : i32
    return %arg0, %arg1 : i32, i32
  }
}

</mosaic_0001>

<bundles_post_ra>
// kernel: tpu_custom_call.1
= control target key start
LH: loop header
LB: loop body
LE: loop exit
PB: predicated region body
PF: predicated region fallthrough
CT: control target
= control target key end

     0   :  { %9 = vsyncpa [#allocation4], 0  ;;  %s362_s0 = inlined_call_operand.vmem [shape: f32[8,128], index: 0, kind: input, shape index: {}]   ;;  %s363_s1 = inlined_call_operand.hbm [shape: f32[128,128], index: 1, kind: input, shape index: {}]   ;;  %s364_s2 = inlined_call_operand.vmem [shape: f32[8,1], index: 2, kind: input, shape index: {}]   ;;  %s365_s3 = inlined_call_operand.vmem [shape: f32[1,128], index: 3, kind: input, shape index: {}]   ;;  %s366_s4 = inlined_call_operand.hbm [shape: f32[8,128], index: 4, kind: output, shape index: {}]  }
   0x1   :  { %10 = vsyncpa [#allocation5], 0  ;;  %s296_s15 = smov [#allocation3]   ;;  %s248_s19 = scalar_lea.hbm %s363_s1, 2048 }
   0x2   :  { %s18_s16 = sshll.u32 %s296_s15, 4  ;;  %p249_p0 = scmp.ne.s32.totalorder %s363_s1, %s248_s19  ;;  %s19_s16 = int_to_ptr.vmem [resolvable:$true] %s18_s16 }
   0x3   :  { %p252_p1 = scmp.lt.u32.totalorder %s248_s19, %s363_s1 }
   0x5   :  { %p254_p2 = pnand %p252_p1, %p249_p0 }
   0x7   :  { %257 = shalt.err (!%p254_p2)
}
   0x8   :  { %s258_s24 = scalar_lea.vmem %s19_s16, 2048  ;;  %p263_p4 = scmp.lt.s32.totalorder %s19_s16, %s19_s16 }
   0x9   :  { %p259_p3 = scmp.ne.s32.totalorder %s19_s16, %s258_s24  ;;  %p264_p5 = scmp.lt.s32.totalorder %s258_s24, %s258_s24 }
   0xb   :  { %p265_p6 = por %p264_p5, %p263_p4 }
   0xd   :  { %p266_p7 = pnand %p265_p6, %p259_p3 }
   0xf   :  { %269 = shalt.err (!%p266_p7)
}
  0x10   :  { %s297_s25 = smov 128   ;;  %s298_s26 = smov 8  }
  0x11   :  { %24 = dma.hbm_to_vmem [thread:$0]  %s363_s1, 2048, %s19_s16, [#allocation4], %s297_s25, %s297_s25, %s298_s26  }
  0x12   :  { %292 = dma.done.wait [#allocation4], 2048  }
  0x13   :  { %293 = vsyncadd [#allocation4], 4294965248  ;;  %v299_v0 = vmov 0.0|0.0   ;;  %vm300_vm0 = vmmov 0   ;;  %v301_v1 = vmov 0.0   ;;  %v302_v2 = vmov 0  }
  0x14   :  { %215 = vmatprep.subr.bf16.mxu0 %v299_v0  ;;  %212 = vmatprep.mubr.msk.f32.mxu0 %vm300_vm0, %v301_v1  ;;  %v38_v3 = vld [vmem:[#allocation3] sm:$0xff]  ;;  %v39_v4 = vld [vmem:[#allocation3 + $0x8] sm:$0xff]  ;;  %v40_v6 = vld [vmem:[#allocation3 + $0x10] sm:$0xff]  ;;  %s303_s7 = smov [#allocation6]  }
  0x15   :  { %247 = vset.pattern.permute.xlu0 %v302_v2  ;;  %v216_v5 = vpack.c.bf16 %v39_v4, %v38_v3  ;;  %v41_v7 = vld [vmem:[#allocation3 + $0x18] sm:$0xff]  ;;  %v131_v8 = vld [vmem:[%s364_s2] sm:$0xff]  ;;  %v43_v11 = vld [vmem:[#allocation3 + $0x28] sm:$0xff]  ;;  %s153_s8 = sshll.u32 %s303_s7, 4  ;;  %s154_s8 = int_to_ptr.vmem [resolvable:$true] %s153_s8 }
  0x16   :  { %134 = vperm.xlu0 %247, %v131_v8   ;;  %v219_v9 = vpack.c.bf16 %v41_v7, %v40_v6  ;;  %v42_v10 = vld [vmem:[#allocation3 + $0x20] sm:$0xff]  ;;  %v44_v13 = vld [vmem:[#allocation3 + $0x30] sm:$0xff]  ;;  %v45_v14 = vld [vmem:[#allocation3 + $0x38] sm:$0xff]  ;;  %s270_s9 = scalar_lea.vmem %s154_s8, 128  ;;  %p275_p9 = scmp.lt.s32.totalorder %s154_s8, %s154_s8 }
  0x17   :  { %217 = vmatpush3.bf16.xpose.msra.mxu0 %v216_v5  ;;  %v222_v12 = vpack.c.bf16 %v43_v11, %v42_v10  ;;  %v225_v15 = vpack.c.bf16 %v45_v14, %v44_v13  ;;  %v46_v16 = vld [vmem:[#allocation3 + $0x40] sm:$0xff]  ;;  %v47_v17 = vld [vmem:[#allocation3 + $0x48] sm:$0xff]  ;;  %v48_v19 = vld [vmem:[#allocation3 + $0x50] sm:$0xff]  ;;  %p271_p8 = scmp.ne.s32.totalorder %s154_s8, %s270_s9  ;;  %p276_p10 = scmp.lt.s32.totalorder %s270_s9, %s270_s9 }
  0x18   :  { %218 = vmatprep.subr.bf16.mxu0 %v299_v0  ;;  %v228_v18 = vpack.c.bf16 %v47_v17, %v46_v16  ;;  %v49_v20 = vld [vmem:[#allocation3 + $0x58] sm:$0xff]  ;;  %v50_v22 = vld [vmem:[#allocation3 + $0x60] sm:$0xff]  ;;  %v51_v23 = vld [vmem:[#allocation3 + $0x68] sm:$0xff] }
  0x19   :  { %v231_v21 = vpack.c.bf16 %v49_v20, %v48_v19  ;;  %v234_v24 = vpack.c.bf16 %v51_v23, %v50_v22  ;;  %v52_v25 = vld [vmem:[#allocation3 + $0x70] sm:$0xff]  ;;  %v53_v26 = vld [vmem:[#allocation3 + $0x78] sm:$0xff]  ;;  %v37_v28 = vld [vmem:[%s362_s0] sm:$0xff]  ;;  %p277_p11 = por %p276_p10, %p275_p9 }
  0x1a   :  { %v237_v27 = vpack.c.bf16 %v53_v26, %v52_v25  ;;  %v162_v31 = vld [vmem:[%s365_s3] ss:$0 sm:$0xff] }
  0x1b   :  { %p278_p12 = pnand %p277_p11, %p271_p8 }
  0x1f   :  { %220 = vmatpush3.bf16.xpose.msra.mxu0 %v219_v9 }
  0x20   :  { %221 = vmatprep.subr.bf16.mxu0 %v299_v0 }
  0x27   :  { %223 = vmatpush3.bf16.xpose.msra.mxu0 %v222_v12 }
  0x28   :  { %224 = vmatprep.subr.bf16.mxu0 %v299_v0 }
  0x2f   :  { %226 = vmatpush3.bf16.xpose.msra.mxu0 %v225_v15 }
  0x30   :  { %227 = vmatprep.subr.bf16.mxu0 %v299_v0 }
  0x37   :  { %229 = vmatpush3.bf16.xpose.msra.mxu0 %v228_v18 }
  0x38   :  { %230 = vmatprep.subr.bf16.mxu0 %v299_v0 }
  0x3f   :  { %232 = vmatpush3.bf16.xpose.msra.mxu0 %v231_v21 }
  0x40   :  { %233 = vmatprep.subr.bf16.mxu0 %v299_v0 }
  0x47   :  { %235 = vmatpush3.bf16.xpose.msra.mxu0 %v234_v24 }
  0x48   :  { %236 = vmatprep.subr.bf16.mxu0 %v299_v0 }
  0x4f   :  { %238 = vmatpush3.bf16.xpose.msra.mxu0 %v237_v27 }
  0x56   :  { %213 = vmatmul.mubr.f32.vlgmr.msra.gmra.mrb[0].mxu0 %v37_v28 }
  0x95   :  { %v135_v29 = vpop.permute.xlu0 %134 }
 0x129   :  { %v121_v30 = vpop.f32.mrb[0].mxu0 }
 0x12a   :  { %v137_v32 = vmul.f32 %v135_v29, %v121_v30  ;;  %v214_v33 = vpop.f32.mrb[1].mxu0 }
 0x12c   :  { %v145_v34 = vmul.f32 %v162_v31, %v137_v32 }
 0x12e   :  { %146 = vst [vmem:[#allocation6] sm:$0xff] %v145_v34 }
 0x12f   :  { %281 = shalt.err (!%p278_p12)
}
 0x130   :  { %s282_s11 = scalar_lea.hbm %s366_s4, 128 }
 0x131   :  { %p283_p13 = scmp.ne.s32.totalorder %s366_s4, %s282_s11  ;;  %p286_p0 = scmp.lt.u32.totalorder %s282_s11, %s366_s4 }
 0x133   :  { %p288_p1 = pnand %p286_p0, %p283_p13 }
 0x135   :  { %291 = shalt.err (!%p288_p1)
}
 0x136   :  { %156 = dma.vmem_to_hbm [thread:$0]  %s154_s8, 128, %s366_s4, [#allocation5]  }
 0x137   :  { %294 = dma.done.wait [#allocation5], 128  }
 0x138   :  { %295 = vsyncadd [#allocation5], 4294967168 }
 0x139   :  { %160 = vsyncpa [#allocation4], 1 }
 0x13a   :  { %161 = vsyncpa [#allocation5], 1 }

</bundles_post_ra>
